<compile_context>
chip_gen: v6e
topology: v6e:2x2x1
jax: 0.10.0
libtpu: 0.0.40
codegen_flags: <defaults>
</compile_context>

<pallas_src>
import functools

import jax
import jax.numpy as jnp
from jax.experimental import pallas as pl
from jax.experimental.pallas import tpu as pltpu

LAYER_SIZES = (16, 32, 32, 1)   # layer_sizes[0]=input dim, last=output dim
BETA = 5.0                      # torch.abs(self.beta), beta frozen at 5.0


def _softplus(v):
    # numerically-stable softplus: VPU max/abs + EUP exp/log1p
    return jnp.maximum(v, 0.0) + jnp.log1p(jnp.exp(-jnp.abs(v)))


def _icnn_kernel(n_layers, *refs):
    """refs = (xT, G[0..n-1], b[0..n-1], out) — batch-in-lanes layout.

    All tensors are (features, batch_tile):
      z   = softplus(beta*(G0 @ x + b0)) / beta
      z   = softplus(beta*(Gi @ [x; z] + bi)) / beta     Gi = [Wi | softplus(Ui-1)/ni]
      out = 0.1 * (Gn @ [x; z] + bn)                     (rows padded to 8)
    """
    x_ref = refs[0]
    g_refs = refs[1:1 + n_layers]
    b_refs = refs[1 + n_layers:1 + 2 * n_layers]
    out_ref = refs[-1]

    beta = jnp.float32(BETA)
    inv_beta = jnp.float32(1.0 / BETA)   # multiply instead of divide

    x = x_ref[...]                       # (D0, tb), bf16, batch along lanes

    # first layer: one MXU dot, f32 accumulation
    z = jnp.dot(g_refs[0][...], x, preferred_element_type=jnp.float32) + b_refs[0][...]
    z = _softplus(z * beta) * inv_beta   # activation math kept in f32

    # hidden layers: one fused MXU dot per layer on concat([x; z]) (sublane
    # concat; offsets are multiples of 16 -> no intra-vreg data movement)
    for li in range(1, n_layers - 1):
        c = jnp.concatenate([x, z.astype(x.dtype)], axis=0)
        z = jnp.dot(g_refs[li][...], c, preferred_element_type=jnp.float32) + b_refs[li][...]
        z = _softplus(z * beta) * inv_beta

    # final layer (rows padded to 8 in the wrapper), scaled by 0.1
    c = jnp.concatenate([x, z.astype(x.dtype)], axis=0)
    v = jnp.dot(g_refs[-1][...], c, preferred_element_type=jnp.float32) + b_refs[-1][...]
    out_ref[...] = (v * jnp.float32(0.1)).astype(out_ref.dtype)


def icnn_forward(x, W, U, b, *, tb=512, mxu_dtype=jnp.bfloat16):
    """x: (B, D0); W[i]: (D_{i+1}, D0); U[i]: (D_{i+2}, D_{i+1}); b[i]: (D_{i+1},).

    Returns (B, d_out), matching ICNN.forward semantics.
    """
    B, D0 = x.shape
    n_layers = len(W)
    assert len(b) == n_layers and len(U) == n_layers - 1
    assert tb % 128 == 0, "batch tile must be lane-aligned (multiple of 128)"
    d_out = W[-1].shape[0]
    d_pad = max(8, -(-d_out // 8) * 8)          # pad final rows to a sublane multiple

    f32 = jnp.float32

    # --- hoisted weight prep (runs once, outside the grid) -------------------
    G = [W[0].astype(f32)]
    for i in range(1, n_layers):
        u_sp = _softplus(U[i - 1].astype(f32)) * (1.0 / U[i - 1].shape[0])
        G.append(jnp.concatenate([W[i].astype(f32), u_sp], axis=1))   # [W | sp(U)/n]
    G[-1] = jnp.pad(G[-1], ((0, d_pad - d_out), (0, 0)))              # zero rows
    G = [g.astype(mxu_dtype) for g in G]                              # bf16 MXU operands
    bias = [bi.reshape(-1, 1).astype(f32) for bi in b]
    bias[-1] = jnp.pad(bias[-1], ((0, d_pad - d_out), (0, 0)))

    # --- batch-in-lanes input: x^T (D0, Bp), batch padded to a tile multiple --
    n_tiles = -(-B // tb)
    Bp = n_tiles * tb
    xT = jnp.pad(x.T.astype(mxu_dtype), ((0, 0), (0, Bp - B)))

    in_specs = [pl.BlockSpec((D0, tb), lambda i: (0, i))]                     # x tile
    in_specs += [pl.BlockSpec(g.shape, lambda i: (0, 0)) for g in G]          # resident
    in_specs += [pl.BlockSpec(bi.shape, lambda i: (0, 0)) for bi in bias]     # resident
    out_spec = pl.BlockSpec((d_pad, tb), lambda i: (0, i))                    # lane-dense

    out = pl.pallas_call(
        functools.partial(_icnn_kernel, n_layers),
        grid=(n_tiles,),
        in_specs=in_specs,
        out_specs=out_spec,
        out_shape=jax.ShapeDtypeStruct((d_pad, Bp), f32),
        compiler_params=pltpu.CompilerParams(dimension_semantics=("parallel",)),
    )(xT, *G, *bias)

    return out[:d_out, :B].T.astype(x.dtype)


def init_params(key, layer_sizes):
    """Deterministic init mirroring reset_parameters (kaiming_uniform, a=sqrt(0.1))."""
    ls = layer_sizes
    n = len(ls) - 1
    keys = jax.random.split(key, 3 * n)
    a = 0.1 ** 0.5

    def ku_bound(fan_in):
        return (6.0 / ((1.0 + a * a) * fan_in)) ** 0.5

    W = [jax.random.uniform(keys[i], (ls[i + 1], ls[0]), jnp.float32,
                            -ku_bound(ls[0]), ku_bound(ls[0]))
         for i in range(n)]
    U = [jax.random.uniform(keys[n + i], (ls[i + 2], ls[i + 1]), jnp.float32,
                            -ku_bound(ls[i + 1]), ku_bound(ls[i + 1]))
         for i in range(n - 1)]
    bias_bound = 1.0 / (ls[0] ** 0.5)
    b = [jax.random.uniform(keys[2 * n + i], (ls[i + 1],), jnp.float32,
                            -bias_bound, bias_bound)
         for i in range(n)]
    return W, U, b


def reference(x, W, U, b):
    """Pure-JAX (f32) re-statement of ICNN.forward for correctness checking."""
    beta = abs(BETA)
    z = x @ W[0].T + b[0]
    z = _softplus(z * beta) / beta
    for Wi, bi, Ui in zip(W[1:-1], b[1:-1], U[:-1]):
        z = x @ Wi.T + bi + (z @ _softplus(Ui).T) / Ui.shape[0]
        z = _softplus(z * beta) / beta
    V = x @ W[-1].T + b[-1] + (z @ _softplus(U[-1]).T) / U[-1].shape[0]
    return V * 0.1


if __name__ == "__main__":
    key = jax.random.PRNGKey(0)
    kx, kp = jax.random.split(key)

    # Feature dims are the module's small LAYER_SIZES; batch is chosen so the
    # lane tile is large (tb=512) and the grid still has 2 steps (megacore on v7x).
    B = 1024
    x = jax.random.normal(kx, (B, LAYER_SIZES[0]), jnp.float32)
    W, U, b = init_params(kp, LAYER_SIZES)

    out = icnn_forward(x, W, U, b, tb=512)
    out = jax.block_until_ready(out)

    ref = reference(x, W, U, b)
    assert out.shape == (B, LAYER_SIZES[-1])
    # Tolerance sized for bf16 MXU operands (f32 accumulation / activations);
    # observed error is ~1e-3 absolute on O(1) outputs.
    assert jnp.allclose(out, ref, atol=3e-3, rtol=1e-2), "Pallas ICNN mismatch vs reference"

    print("KERNEL_OK")
</pallas_src>

<mosaic_0001>
module attributes {stable_mosaic.version = 11 : i64} {
  func.func @_icnn_kernel(%arg0: i32, %arg1: memref<16x512xbf16, #tpu.memory_space<vmem>>, %arg2: memref<32x16xbf16, #tpu.memory_space<vmem>>, %arg3: memref<32x48xbf16, #tpu.memory_space<vmem>>, %arg4: memref<8x48xbf16, #tpu.memory_space<vmem>>, %arg5: memref<32x1xf32, #tpu.memory_space<vmem>>, %arg6: memref<32x1xf32, #tpu.memory_space<vmem>>, %arg7: memref<8x1xf32, #tpu.memory_space<vmem>>, %arg8: memref<8x512xf32, #tpu.memory_space<vmem>>) attributes {dimension_semantics = [#tpu.dimension_semantics<parallel>], iteration_bounds = array<i64: 2>, scalar_prefetch = 0 : i64, scratch_operands = 0 : i64, tpu.core_type = #tpu.core_type<tc>, window_params = [{transform_indices = @transform_0, window_bounds = array<i64: 16, 512>}, {pipeline_mode = #tpu.pipeline_mode<synchronous>, transform_indices = @transform_1, window_bounds = array<i64: 32, 16>}, {pipeline_mode = #tpu.pipeline_mode<synchronous>, transform_indices = @transform_2, window_bounds = array<i64: 32, 48>}, {pipeline_mode = #tpu.pipeline_mode<synchronous>, transform_indices = @transform_3, window_bounds = array<i64: 8, 48>}, {pipeline_mode = #tpu.pipeline_mode<synchronous>, transform_indices = @transform_4, window_bounds = array<i64: 32, 1>}, {pipeline_mode = #tpu.pipeline_mode<synchronous>, transform_indices = @transform_5, window_bounds = array<i64: 32, 1>}, {pipeline_mode = #tpu.pipeline_mode<synchronous>, transform_indices = @transform_6, window_bounds = array<i64: 8, 1>}, {transform_indices = @transform_7, window_bounds = array<i64: 8, 512>}]} {
    %c0 = arith.constant 0 : index
    %c0_0 = arith.constant 0 : index
    %0 = vector.load %arg1[%c0, %c0_0] : memref<16x512xbf16, #tpu.memory_space<vmem>>, vector<16x512xbf16>
    %c0_1 = arith.constant 0 : index
    %c0_2 = arith.constant 0 : index
    %1 = vector.load %arg2[%c0_1, %c0_2] : memref<32x16xbf16, #tpu.memory_space<vmem>>, vector<32x16xbf16>
    %cst = arith.constant dense<0.000000e+00> : vector<32x512xf32>
    %2 = tpu.matmul %1, %0, %cst {dimension_numbers = #tpu.dot_dimension_numbers<[1], [0], [0], [1], [0, 0, 1, 1], [], []>} : vector<32x16xbf16>, vector<16x512xbf16>, vector<32x512xf32> -> vector<32x512xf32>
    %c0_3 = arith.constant 0 : index
    %c0_4 = arith.constant 0 : index
    %3 = vector.load %arg5[%c0_3, %c0_4] : memref<32x1xf32, #tpu.memory_space<vmem>>, vector<32x1xf32>
    %4 = vector.broadcast %3 : vector<32x1xf32> to vector<32x512xf32>
    %5 = arith.addf %2, %4 : vector<32x512xf32>
    %cst_5 = arith.constant 5.000000e+00 : f32
    %6 = vector.broadcast %cst_5 : f32 to vector<32x512xf32>
    %7 = arith.mulf %5, %6 : vector<32x512xf32>
    %cst_6 = arith.constant 0.000000e+00 : f32
    %8 = vector.broadcast %cst_6 : f32 to vector<32x512xf32>
    %9 = arith.maximumf %7, %8 : vector<32x512xf32>
    %10 = math.absf %7 : vector<32x512xf32>
    %cst_7 = arith.constant 0.000000e+00 : f32
    %11 = vector.broadcast %cst_7 : f32 to vector<32x512xf32>
    %12 = arith.subf %11, %10 : vector<32x512xf32>
    %13 = math.exp %12 : vector<32x512xf32>
    %14 = math.log1p %13 : vector<32x512xf32>
    %15 = arith.addf %9, %14 : vector<32x512xf32>
    %cst_8 = arith.constant 2.000000e-01 : f32
    %16 = vector.broadcast %cst_8 : f32 to vector<32x512xf32>
    %17 = arith.mulf %15, %16 : vector<32x512xf32>
    %18 = arith.truncf %17 : vector<32x512xf32> to vector<32x512xbf16>
    %19 = tpu.concatenate %0, %18 in 0 : vector<16x512xbf16>, vector<32x512xbf16> -> vector<48x512xbf16>
    %c0_9 = arith.constant 0 : index
    %c0_10 = arith.constant 0 : index
    %20 = vector.load %arg3[%c0_9, %c0_10] : memref<32x48xbf16, #tpu.memory_space<vmem>>, vector<32x48xbf16>
    %cst_11 = arith.constant dense<0.000000e+00> : vector<32x512xf32>
    %21 = tpu.matmul %20, %19, %cst_11 {dimension_numbers = #tpu.dot_dimension_numbers<[1], [0], [0], [1], [0, 0, 1, 1], [], []>} : vector<32x48xbf16>, vector<48x512xbf16>, vector<32x512xf32> -> vector<32x512xf32>
    %c0_12 = arith.constant 0 : index
    %c0_13 = arith.constant 0 : index
    %22 = vector.load %arg6[%c0_12, %c0_13] : memref<32x1xf32, #tpu.memory_space<vmem>>, vector<32x1xf32>
    %23 = vector.broadcast %22 : vector<32x1xf32> to vector<32x512xf32>
    %24 = arith.addf %21, %23 : vector<32x512xf32>
    %cst_14 = arith.constant 5.000000e+00 : f32
    %25 = vector.broadcast %cst_14 : f32 to vector<32x512xf32>
    %26 = arith.mulf %24, %25 : vector<32x512xf32>
    %cst_15 = arith.constant 0.000000e+00 : f32
    %27 = vector.broadcast %cst_15 : f32 to vector<32x512xf32>
    %28 = arith.maximumf %26, %27 : vector<32x512xf32>
    %29 = math.absf %26 : vector<32x512xf32>
    %cst_16 = arith.constant 0.000000e+00 : f32
    %30 = vector.broadcast %cst_16 : f32 to vector<32x512xf32>
    %31 = arith.subf %30, %29 : vector<32x512xf32>
    %32 = math.exp %31 : vector<32x512xf32>
    %33 = math.log1p %32 : vector<32x512xf32>
    %34 = arith.addf %28, %33 : vector<32x512xf32>
    %cst_17 = arith.constant 2.000000e-01 : f32
    %35 = vector.broadcast %cst_17 : f32 to vector<32x512xf32>
    %36 = arith.mulf %34, %35 : vector<32x512xf32>
    %37 = arith.truncf %36 : vector<32x512xf32> to vector<32x512xbf16>
    %38 = tpu.concatenate %0, %37 in 0 : vector<16x512xbf16>, vector<32x512xbf16> -> vector<48x512xbf16>
    %c0_18 = arith.constant 0 : index
    %c0_19 = arith.constant 0 : index
    %39 = vector.load %arg4[%c0_18, %c0_19] : memref<8x48xbf16, #tpu.memory_space<vmem>>, vector<8x48xbf16>
    %cst_20 = arith.constant dense<0.000000e+00> : vector<8x512xf32>
    %40 = tpu.matmul %39, %38, %cst_20 {dimension_numbers = #tpu.dot_dimension_numbers<[1], [0], [0], [1], [0, 0, 1, 1], [], []>} : vector<8x48xbf16>, vector<48x512xbf16>, vector<8x512xf32> -> vector<8x512xf32>
    %c0_21 = arith.constant 0 : index
    %c0_22 = arith.constant 0 : index
    %41 = vector.load %arg7[%c0_21, %c0_22] : memref<8x1xf32, #tpu.memory_space<vmem>>, vector<8x1xf32>
    %42 = vector.broadcast %41 : vector<8x1xf32> to vector<8x512xf32>
    %43 = arith.addf %40, %42 : vector<8x512xf32>
    %cst_23 = arith.constant 1.000000e-01 : f32
    %44 = vector.broadcast %cst_23 : f32 to vector<8x512xf32>
    %45 = arith.mulf %43, %44 : vector<8x512xf32>
    %c0_24 = arith.constant 0 : index
    %c0_25 = arith.constant 0 : index
    %46 = vector.load %arg8[%c0_24, %c0_25] : memref<8x512xf32, #tpu.memory_space<vmem>>, vector<8x512xf32>
    tpu.vector_store %arg8[%c0_24, %c0_25], %45 {strides = array<i32>} : memref<8x512xf32, #tpu.memory_space<vmem>>, vector<8x512xf32>,
    return
  }
  func.func @transform_0(%arg0: i32) -> (i32, i32) {
    %c0_i32 = arith.constant 0 : i32
    %c0_i32_0 = arith.constant 0 : i32
    return %c0_i32, %arg0 : i32, i32
  }
  func.func @transform_1(%arg0: i32) -> (i32, i32) {
    %c0_i32 = arith.constant 0 : i32
    %c0_i32_0 = arith.constant 0 : i32
    %c0_i32_1 = arith.constant 0 : i32
    return %c0_i32, %c0_i32_0 : i32, i32
  }
  func.func @transform_2(%arg0: i32) -> (i32, i32) {
    %c0_i32 = arith.constant 0 : i32
    %c0_i32_0 = arith.constant 0 : i32
    %c0_i32_1 = arith.constant 0 : i32
    return %c0_i32, %c0_i32_0 : i32, i32
  }
  func.func @transform_3(%arg0: i32) -> (i32, i32) {
    %c0_i32 = arith.constant 0 : i32
    %c0_i32_0 = arith.constant 0 : i32
    %c0_i32_1 = arith.constant 0 : i32
    return %c0_i32, %c0_i32_0 : i32, i32
  }
  func.func @transform_4(%arg0: i32) -> (i32, i32) {
    %c0_i32 = arith.constant 0 : i32
    %c0_i32_0 = arith.constant 0 : i32
    %c0_i32_1 = arith.constant 0 : i32
    return %c0_i32, %c0_i32_0 : i32, i32
  }
  func.func @transform_5(%arg0: i32) -> (i32, i32) {
    %c0_i32 = arith.constant 0 : i32
    %c0_i32_0 = arith.constant 0 : i32
    %c0_i32_1 = arith.constant 0 : i32
    return %c0_i32, %c0_i32_0 : i32, i32
  }
  func.func @transform_6(%arg0: i32) -> (i32, i32) {
    %c0_i32 = arith.constant 0 : i32
    %c0_i32_0 = arith.constant 0 : i32
    %c0_i32_1 = arith.constant 0 : i32
    return %c0_i32, %c0_i32_0 : i32, i32
  }
  func.func @transform_7(%arg0: i32) -> (i32, i32) {
    %c0_i32 = arith.constant 0 : i32
    %c0_i32_0 = arith.constant 0 : i32
    return %c0_i32, %arg0 : i32, i32
  }
}

</mosaic_0001>

<bundles_post_ra>
// kernel: tpu_custom_call.1
= control target key start
LH: loop header
LB: loop body
LE: loop exit
PB: predicated region body
PF: predicated region fallthrough
CT: control target
= control target key end

     0   :  { %12 = vsyncpa [#allocation4], 0  ;;  %s2531_s0 = inlined_call_operand.vmem [shape: bf16[16,1024], index: 0, kind: input, shape index: {}]   ;;  %s2532_s1 = inlined_call_operand.vmem [shape: bf16[32,16], index: 1, kind: input, shape index: {}]   ;;  %s2533_s2 = inlined_call_operand.vmem [shape: bf16[32,48], index: 2, kind: input, shape index: {}]   ;;  %s2534_s3 = inlined_call_operand.vmem [shape: bf16[8,48], index: 3, kind: input, shape index: {}]   ;;  %s2535_s4 = inlined_call_operand.vmem [shape: f32[32,1], index: 4, kind: input, shape index: {}]   ;;  %s2536_s5 = inlined_call_operand.vmem [shape: f32[32,1], index: 5, kind: input, shape index: {}]   ;;  %s2537_s6 = inlined_call_operand.vmem [shape: f32[8,1], index: 6, kind: input, shape index: {}]   ;;  %s2538_s7 = inlined_call_operand.hbm [shape: f32[8,1024], index: 7, kind: output, shape index: {}]  }
   0x1   :  { %14 = vsyncpa [#allocation4 + $0x1], 0  ;;  %s1694_s24 = smov 0   ;;  %s1696_s25 = smov 0  }
   0x2   :  { %s1698_s26 = smov 0   ;;  %s1700_s27 = smov 0  }
   0x3 LB: > { %s1371_s28 = sadd.s32 4294967295, %s1650_s27   ;;  %s1372_s29 = sadd.s32 4294967294, %s1650_s27   ;;  %s1650_s27 = sphi %s1700_s27, %s2628_s27   ;;  %s1646_s26 = sphi %s1698_s26, %s2627_s26   ;;  %s1642_s25 = sphi %s1696_s25, %s2626_s25   ;;  %s1638_s24 = sphi %s1694_s24, %s2625_s24  }
   0x4   : > { %s1717_s30 = sadd.s32 1, %s1650_s27   ;;  %s27_s8 = sadd.s32 1, %s1646_s26 }
   0x5   : > { %s24_s9 = ssub.s32 %s1650_s27, %s1717_s30  ;;  %p34_p0 = scmp.ne.s32.totalorder %s1646_s26, %s1642_s25 }
   0x6   : > { %p25_p1 = scmp.eq.s32.totalorder %s24_s9, 0  ;;  %p35_p2 = scmp.eq.s32.totalorder %s1650_s27, 0 }
   0x7   : > { %p190_p3 = scmp.eq.s32.totalorder %s1371_s28, 1  ;;  %p195_p4 = scmp.ne.s32.totalorder %s1642_s25, %s1638_s24 }
   0x8   : > { %s1730_s10 = scalar_select %p25_p1, %s1646_s26, %s27_s8  }
   0x9   : > { %p36_p5 = por %p35_p2, %p34_p0  ;;  %p1732_p6 = por %p190_p3, %p34_p0 }
   0xa   : > { %p196_p7 = scmp.eq.s32.totalorder %s1372_s29, 1  ;;  %p1374_p9 = scmp.ge.s32.totalorder %s1650_s27, 2 }
   0xc   : > { %p1736_p8 = por %p196_p7, %p195_p4  ;;  %230 = sbr.rel (%p1374_p9) target bundleno = 23 (0x17), region = 40 }
  0x11   : > { %233 = sbr.rel (!%p36_p5) target bundleno = 23 (0x17), region = 44  ;;  %s235_s13 = sand.u32 (%p36_p5), 1, %s1646_s26  }
  0x12   : > { %s1404_s14 = sshll.u32 (%p36_p5), %s1650_s27, 4  ;;  %s1375_s15 = sshll.u32 (%p36_p5), %s235_s13, 5 }
  0x13   : > { %s240_s18 = scalar_lea.vmem (%p36_p5), %s2531_s0, %s1404_s14  ;;  %s237_s19 = scalar_lea.vmem (%p36_p5), [#allocation2], %s1375_s15 }
  0x14   : > { %v253_v0 = vld [vmem:[%s240_s18] sm:$0xff] (%p36_p5)  ;;  %v255_v1 = vld [vmem:[%s240_s18 + $0x8] sm:$0xff] (%p36_p5) }
  0x15   : > { %v257_v2 = vld [vmem:[%s240_s18 + $0x20] sm:$0xff] (%p36_p5)  ;;  %254 = vst [vmem:[%s237_s19] sm:$0xff] (%p36_p5), %v253_v0  ;;  %256 = vst [vmem:[%s237_s19 + $0x8] sm:$0xff] (%p36_p5), %v255_v1  ;;  %v259_v3 = vld [vmem:[%s240_s18 + $0x28] sm:$0xff] (%p36_p5) }
  0x16   : > { %258 = vst [vmem:[%s237_s19 + $0x10] sm:$0xff] %v257_v2  ;;  %260 = vst [vmem:[%s237_s19 + $0x18] sm:$0xff] %v259_v3 }
  0x17 PF: > { %p1378_p10 = scmp.ge.s32.totalorder %s1650_s27, 1  ;;  %p265_p11 = scmp.lt.s32.totalorder %s1650_s27, 3 }
  0x19   : > { %p266_p12 = pnand %p1378_p10, %p265_p11 }
  0x1b   : > { %269 = sbr.rel (%p266_p12) target bundleno = 818 (0x332), region = 67 }
  0x20   : > { %s272_s20 = sand.u32 1, %s1642_s25   ;;  %v2539_v4 = vmov 0   ;;  %v316_v5 = vld [vmem:[%s2535_s4 + $0x10] sm:$0xff]  ;;  %v317_v7 = vld [vmem:[%s2535_s4 + $0x18] sm:$0xff]  ;;  %v314_v11 = vld [vmem:[%s2535_s4] sm:$0xff]  ;;  %vm368_vm0 = vcmask 130048  }
  0x21   : > { %s1753_s21 = sshll.u32 %s272_s20, 5  ;;  %407 = vmatprep.mubr.bf16.mxu0 %v2539_v4  ;;  %460 = vmatprep.mubr.bf16.mxu1 %v2539_v4  ;;  %v1454_v12 = vld [vmem:[%s2532_s1] sm:$0xff]   ;;  %v767_v13 = vld [vmem:[%s2536_s5 + $0x10] sm:$0xff]  ;;  %v315_v14 = vld [vmem:[%s2535_s4 + $0x8] sm:$0xff]  ;;  %s1293_s19 = scalar_lea.sflag [#allocation4], %s272_s20 }
  0x22   : > { %1446 = vset.pattern.permute.xlu0 %v2539_v4  ;;  %1447 = vset.pattern.permute.xlu1 %v2539_v4  ;;  %s1763_s29 = scalar_lea.vmem [#allocation2], %s1753_s21  ;;  %v765_v15 = vld [vmem:[%s2536_s5] sm:$0xff]  ;;  %v768_v16 = vld [vmem:[%s2536_s5 + $0x18] sm:$0xff]  ;;  %v1455_v17 = vld [vmem:[%s2532_s1 + $0x8] sm:$0xff]   ;;  %s302_s15 = scalar_lea.vmem [#allocation3], %s1753_s21 }
  0x23   : > { %v1766_v6 = vld [vmem:[%s1763_s29 + $0x4] ss:$16 sps:$4 sm:$0xff]   ;;  %330 = vperm.xlu0 %1446, %v316_v5   ;;  %v1772_v8 = vld [vmem:[%s1763_s29 + $0xc] ss:$16 sps:$4 sm:$0xff]   ;;  %v1776_v9 = vld [vmem:[%s1763_s29] ss:$16 sps:$4 sm:$0xff]   ;;  %320 = vperm.xlu1 %1447, %v314_v11  }
  0x24   : > { %389 = vmatprep.subr.bf16.mxu0 %v1766_v6  ;;  %v1779_v10 = vld [vmem:[%s1763_s29 + $0x8] ss:$16 sps:$4 sm:$0xff]   ;;  %442 = vmatprep.subr.bf16.mxu1 %v1772_v8  ;;  %v1193_v18 = vld [vmem:[%s2537_s6] sm:$0xff]  ;;  %s1307_s16 = sshll.u32 %s302_s15, 4  ;;  %s1308_s16 = int_to_ptr.vmem [resolvable:$true] %s1307_s16 }
  0x25   : > { %2544 = vst [vmem:[#allocation6_spill] sm:$0xff] %v1779_v10  ;;  %390 = vmatpush1.bf16.msra.mxu0 %v1776_v9  ;;  %443 = vmatpush1.bf16.msra.mxu1 %v1779_v10  ;;  %v766_v19 = vld [vmem:[%s2536_s5 + $0x8] sm:$0xff]  ;;  %s1590_s22 = scalar_lea.vmem %s1308_s16, 512 }
  0x26   : > { %p1591_p13 = scmp.ne.s32.totalorder %s1308_s16, %s1590_s22 }
  0x27   : > { %335 = vperm.xlu0 %1446, %v317_v7   ;;  %325 = vperm.xlu1 %1447, %v315_v14  }
  0x28   : > { %1387 = vmatmul.mubr.msk.bf16.vlgmr.msra.gmra.mxu0 %vm368_vm0, %v1454_v12  ;;  %1389 = vmatmul.mubr.msk.bf16.vlgmr.msra.gmra.mxu1 %vm368_vm0, %v1454_v12  ;;  %p1592_p0 = pnand %p1591_p13, %p1732_p6 }
  0x29   : > { %417 = vmatprep.mubr.bf16.mxu0 %v2539_v4  ;;  %470 = vmatprep.mubr.bf16.mxu1 %v2539_v4 }
  0x2a   : > { %p1593_p1 = pneg %p1592_p0 }
  0x2b   : > { %781 = vperm.xlu0 %1446, %v767_v13   ;;  %786 = vperm.xlu1 %1447, %v768_v16  }
  0x2f   : > { %771 = vperm.xlu0 %1446, %v765_v15   ;;  %776 = vperm.xlu1 %1447, %v766_v19  }
  0x30   : > { %1388 = vmatmul.mubr.msk.bf16.gmra.mxu0 %vm368_vm0, %v1455_v17  ;;  %1390 = vmatmul.mubr.msk.bf16.gmra.mxu1 %vm368_vm0, %v1455_v17 }
  0x31   : > { %838 = vmatprep.mubr.bf16.mxu0 %v2539_v4  ;;  %891 = vmatprep.mubr.bf16.mxu1 %v2539_v4 }
  0x33   : > { %1196 = vperm.xlu0 %1446, %v1193_v18  }
  0x9e   : > { %v321_v23 = vpop.permute.xlu1 %320  ;;  %v331_v46 = vpop.permute.xlu0 %330 }
  0xa2   : > { %v326_v29 = vpop.permute.xlu1 %325  ;;  %v336_v14 = vpop.permute.xlu0 %335 }
  0xe8   : > { %v409_v20 = vpop.f32.mrf.mxu0  ;;  %v462_v21 = vpop.f32.mrf.mxu1 }
  0xe9   : > { %v410_v26 = vadd.f32 %v409_v20, %v321_v23  ;;  %v463_v27 = vadd.f32 %v462_v21, %v321_v23 }
  0xea   : > { %v411_v22 = vpop.f32.mrf.mxu0  ;;  %v464_v24 = vpop.f32.mrf.mxu1 }
  0xeb   : > { %v412_v28 = vadd.f32 %v411_v22, %v321_v23  ;;  %v465_v31 = vadd.f32 %v464_v24, %v321_v23  ;;  %v1819_v33 = vmul.f32 5.0, %v410_v26  ;;  %v1821_v34 = vmul.f32 5.0, %v463_v27 }
  0xec   : > { %v413_v25 = vpop.f32.mrf.mxu0  ;;  %v466_v30 = vpop.f32.mrf.mxu1 }
  0xed   : > { %v414_v35 = vadd.f32 %v413_v25, %v326_v29  ;;  %v1823_v36 = vmul.f32 5.0, %v412_v28  ;;  %v1825_v39 = vmul.f32 5.0, %v465_v31  ;;  %v513_v40 = vand.u32 2147483647, %v1819_v33 }
  0xee   : > { %v415_v32 = vpop.f32.mrf.mxu0  ;;  %v468_v38 = vpop.f32.mrf.mxu1  ;;  %v467_v41 = vadd.f32 %v466_v30, %v326_v29  ;;  %v515_v43 = vand.u32 2147483647, %v1821_v34 }
  0xef   : > { %v416_v37 = vadd.f32 %v415_v32, %v326_v29  ;;  %v1829_v44 = vmul.f32 5.0, %v414_v35  ;;  %v469_v45 = vadd.f32 %v468_v38, %v326_v29  ;;  %v514_v47 = vand.u32 2147483647, %v1823_v36 }
  0xf0   : > { %v419_v42 = vpop.f32.mrf.mxu0  ;;  %v516_v49 = vand.u32 2147483647, %v1825_v39  ;;  %v472_v51 = vpop.f32.mrf.mxu1  ;;  %v529_v52 = vsub.f32 0.0, %v513_v40  ;;  %v1835_v53 = vmul.f32 5.0, %v467_v41  ;;  %v531_v55 = vsub.f32 0.0, %v515_v43 }
  0xf1   : > { %v1832_v48 = vmul.f32 5.0, %v416_v37  ;;  %v420_v50 = vadd.f32 %v419_v42, %v331_v46  ;;  %v517_v56 = vand.u32 2147483647, %v1829_v44  ;;  %v1838_v57 = vmul.f32 5.0, %v469_v45 }
  0xf2   : > { %v421_v54 = vpop.f32.mrf.mxu0  ;;  %v530_v58 = vsub.f32 0.0, %v514_v47  ;;  %v532_v60 = vsub.f32 0.0, %v516_v49  ;;  %v474_v63 = vpop.f32.mrf.mxu1  ;;  %v545_v0 = vmul.f32 1.442695, %v529_v52  ;;  %v519_v1 = vand.u32 2147483647, %v1835_v53 }
  0xf3   : > { %v518_v59 = vand.u32 2147483647, %v1832_v48  ;;  %v1841_v61 = vmul.f32 5.0, %v420_v50  ;;  %v422_v62 = vadd.f32 %v421_v54, %v331_v46  ;;  %v549_v2 = vmul.f32 1.442695, %v531_v55 }
  0xf4   : > { %v533_v3 = vsub.f32 0.0, %v517_v56  ;;  %v520_v5 = vand.u32 2147483647, %v1838_v57  ;;  %v423_v7 = vpop.f32.mrf.mxu0  ;;  %v547_v11 = vmul.f32 1.442695, %v530_v58  ;;  %v475_v13 = vadd.f32 %v474_v63, %v331_v46  ;;  %v476_v32 = vpop.f32.mrf.mxu1 }
  0xf5   : > { %v534_v12 = vsub.f32 0.0, %v518_v59  ;;  %v551_v15 = vmul.f32 1.442695, %v532_v60  ;;  %v521_v16 = vand.u32 2147483647, %v1841_v61  ;;  %v473_v17 = vadd.f32 %v472_v51, %v331_v46 }
  0xf6   : > { %v1846_v18 = vmul.f32 5.0, %v422_v62  ;;  %1458 = vpow2.f32 %v545_v0  ;;  %v535_v19 = vsub.f32 0.0, %v519_v1  ;;  %v424_v20 = vadd.f32 %v423_v7, %v336_v14  ;;  %v425_v43 = vpop.f32.mrf.mxu0  ;;  %v478_v59 = vpop.f32.mrf.mxu1 }
  0xf7   : > { %1460 = vpow2.f32 %v549_v2  ;;  %v553_v21 = vmul.f32 1.442695, %v533_v3  ;;  %v536_v22 = vsub.f32 0.0, %v520_v5  ;;  %v555_v23 = vmul.f32 1.442695, %v534_v12 }
  0xf8   : > { %1462 = vpow2.f32 %v547_v11  ;;  %v1848_v24 = vmul.f32 5.0, %v475_v13  ;;  %v537_v25 = vsub.f32 0.0, %v521_v16  ;;  %v1850_v26 = vmul.f32 5.0, %v473_v17 }
  0xf9   : > { %1464 = vpow2.f32 %v551_v15  ;;  %v522_v27 = vand.u32 2147483647, %v1846_v18  ;;  %v557_v28 = vmul.f32 1.442695, %v535_v19  ;;  %v1853_v29 = vmul.f32 5.0, %v424_v20 }
  0xfa   : > { %1466 = vpow2.f32 %v553_v21  ;;  %v559_v30 = vmul.f32 1.442695, %v536_v22  ;;  %v524_v31 = vand.u32 2147483647, %v1848_v24  ;;  %v561_v35 = vmul.f32 1.442695, %v537_v25 }
  0xfb   : > { %1468 = vpow2.f32 %v555_v23  ;;  %v523_v37 = vand.u32 2147483647, %v1850_v26  ;;  %v538_v38 = vsub.f32 0.0, %v522_v27  ;;  %v525_v40 = vand.u32 2147483647, %v1853_v29 }
  0xfc   : > { %1470 = vpow2.f32 %v557_v28  ;;  %v477_v41 = vadd.f32 %v476_v32, %v336_v14  ;;  %v540_v42 = vsub.f32 0.0, %v524_v31  ;;  %v426_v51 = vadd.f32 %v425_v43, %v336_v14 }
  0xfd   : > { %1472 = vpow2.f32 %v559_v30  ;;  %v539_v45 = vsub.f32 0.0, %v523_v37  ;;  %v563_v46 = vmul.f32 1.442695, %v538_v38  ;;  %v541_v47 = vsub.f32 0.0, %v525_v40 }
  0xfe   : > { %1474 = vpow2.f32 %v561_v35  ;;  %v1860_v50 = vmul.f32 5.0, %v477_v41  ;;  %v567_v54 = vmul.f32 1.442695, %v540_v42  ;;  %v1873_v3 = vmul.f32 5.0, %v426_v51 }
  0xff   : > { %v565_v56 = vmul.f32 1.442695, %v539_v45  ;;  %1476 = vpow2.f32 %v563_v46  ;;  %v569_v58 = vmul.f32 1.442695, %v541_v47  ;;  %v479_v12 = vadd.f32 %v478_v59, %v336_v14 }
 0x100   : > { %v527_v2 = vand.u32 2147483647, %v1860_v50  ;;  %v526_v20 = vand.u32 2147483647, %v1873_v3 }
 0x101   : > { %1478 = vpow2.f32 %v569_v58  ;;  %v1885_v21 = vmul.f32 5.0, %v479_v12 }
 0x102   : > { %1480 = vpow2.f32 %v567_v54  ;;  %v543_v17 = vsub.f32 0.0, %v527_v2  ;;  %v542_v30 = vsub.f32 0.0, %v526_v20 }
 0x103   : > { %v1858_v49 = vpop.eup %1458  ;;  %1482 = vpow2.f32 %v565_v56  ;;  %v528_v31 = vand.u32 2147483647, %v1885_v21 }
 0x104   : > { %v1862_v52 = vpop.eup %1460  ;;  %v577_v63 = vadd.f32 1.0, %v1858_v49  ;;  %v573_v25 = vmul.f32 1.442695, %v543_v17  ;;  %v571_v41 = vmul.f32 1.442695, %v542_v30  ;;  %v580_v43 = vmul.f32 -0.5, %v1858_v49 }
 0x105   : > { %v1864_v55 = vpop.eup %1462  ;;  %v595_v1 = vadd.f32 1.0, %v1862_v52  ;;  %v544_v42 = vsub.f32 0.0, %v528_v31  ;;  %v598_v45 = vmul.f32 -0.5, %v1862_v52  ;;  %v601_v17 = vand.u32 2147483647, %v1862_v52 }
 0x106   : > { %v1866_v60 = vpop.eup %1464  ;;  %v586_v11 = vadd.f32 1.0, %v1864_v55  ;;  %1484 = vlog2.f32 %v577_v63  ;;  %v589_v47 = vmul.f32 -0.5, %v1864_v55  ;;  %v581_v12 = vadd.f32 1.0, %v580_v43 }
 0x107   : > { %v1875_v5 = vpop.eup %1466  ;;  %v604_v16 = vadd.f32 1.0, %v1866_v60  ;;  %1486 = vlog2.f32 %v595_v1  ;;  %v575_v59 = vmul.f32 1.442695, %v544_v42  ;;  %v583_v1 = vand.u32 2147483647, %v1858_v49 }
 0x108   : > { %v1879_v13 = vpop.eup %1468  ;;  %v613_v14 = vadd.f32 1.0, %v1875_v5  ;;  %1488 = vlog2.f32 %v586_v11  ;;  %v607_v2 = vmul.f32 -0.5, %v1866_v60  ;;  %v582_v4 = vmul.f32 %v1858_v49, %v581_v12 }
 0x109   : > { %v1887_v22 = vpop.eup %1470  ;;  %v622_v28 = vadd.f32 1.0, %v1879_v13  ;;  %1490 = vlog2.f32 %v604_v16  ;;  %v599_v16 = vadd.f32 1.0, %v598_v45  ;;  %vm1926_vm1 = vcmp.lt.f32.partialorder %v583_v1, 0.0004427343 }
 0x10a   : > { %v1891_v27 = vpop.eup %1472  ;;  %v631_v40 = vadd.f32 1.0, %v1887_v22  ;;  %1492 = vpow2.f32 %v573_v25  ;;  %v592_v25 = vand.u32 2147483647, %v1864_v55  ;;  %v634_v31 = vmul.f32 -0.5, %v1887_v22 }
 0x10b   : > { %v1898_v38 = vpop.eup %1474  ;;  %1494 = vlog2.f32 %v613_v14  ;;  %v640_v46 = vadd.f32 1.0, %v1891_v27  ;;  %v590_v14 = vadd.f32 1.0, %v589_v47  ;;  %v608_v45 = vadd.f32 1.0, %v607_v2 }
 0x10c   : > { %1496 = vlog2.f32 %v622_v28  ;;  %v649_v56 = vadd.f32 1.0, %v1898_v38  ;;  %v1909_v63 = vpop.eup %1476  ;;  %v616_v28 = vmul.f32 -0.5, %v1875_v5  ;;  %v625_v47 = vmul.f32 -0.5, %v1879_v13 }
 0x10d   : > { %1498 = vpow2.f32 %v571_v41  ;;  %v610_v0 = vand.u32 2147483647, %v1866_v60  ;;  %v643_v23 = vmul.f32 -0.5, %v1891_v27  ;;  %v1939_v1 = vmul.f32 %v1864_v55, %v590_v14 }
 0x10e   : > { %1500 = vlog2.f32 %v631_v40  ;;  %v1915_v20 = vpop.eup %1478  ;;  %v658_v40 = vadd.f32 1.0, %v1909_v63  ;;  %vm1941_vm2 = vcmp.lt.f32.partialorder %v592_v25, 0.0004427343  ;;  %v652_v51 = vmul.f32 -0.5, %v1898_v38 }
 0x10f   : > { %1502 = vlog2.f32 %v640_v46  ;;  %v1919_v30 = vpop.eup %1480  ;;  %v685_v41 = vadd.f32 1.0, %v1915_v20  ;;  %v619_v46 = vand.u32 2147483647, %v1875_v5  ;;  %vm1947_vm3 = vcmp.lt.f32.partialorder %v601_v17, 0.0004427343 }
 0x110   : > { %1504 = vpow2.f32 %v575_v59  ;;  %v1924_v42 = vpop.eup %1482  ;;  %v676_v58 = vadd.f32 1.0, %v1919_v30  ;;  %v617_v12 = vadd.f32 1.0, %v616_v28  ;;  %v1953_v14 = vmul.f32 %v1866_v60, %v608_v45 }
 0x111   : > { %1506 = vlog2.f32 %v649_v56  ;;  %v1934_v56 = vmul.f32 %v1862_v52, %v599_v16  ;;  %v635_v16 = vadd.f32 1.0, %v634_v31  ;;  %v667_v37 = vadd.f32 1.0, %v1924_v42  ;;  %v1456_v52 = vld [vmem:[%s2533_s2] sm:$0xff]  }
 0x112   : > { %1508 = vlog2.f32 %v685_v41  ;;  %vm1955_vm4 = vcmp.lt.f32.partialorder %v619_v46, 0.0004427343  ;;  %v637_v41 = vand.u32 2147483647, %v1887_v22  ;;  %v626_v35 = vadd.f32 1.0, %v625_v47 }
 0x113   : > { %v1485_v59 = vpop.eup %1484  ;;  %1510 = vlog2.f32 %v658_v40  ;;  %v628_v17 = vand.u32 2147483647, %v1879_v13  ;;  %v644_v31 = vadd.f32 1.0, %v643_v23  ;;  %v646_v11 = vand.u32 2147483647, %v1891_v27 }
 0x114   : > { %v1487_v15 = vpop.eup %1486  ;;  %v579_v28 = vmul.f32 0.6931472, %v1485_v59  ;;  %v670_v40 = vmul.f32 -0.5, %v1924_v42  ;;  %vm1965_vm5 = vcmp.lt.f32.partialorder %v610_v0, 0.0004427343  ;;  %v653_v45 = vadd.f32 1.0, %v652_v51 }
 0x115   : > { %v1489_v49 = vpop.eup %1488  ;;  %v655_v46 = vand.u32 2147483647, %v1898_v38  ;;  %1512 = vlog2.f32 %v676_v58  ;;  %v618_v59 = vmul.f32 %v1875_v5, %v617_v12  ;;  %v1973_v23 = vmul.f32 %v1887_v22, %v635_v16 }
 0x116   : > { %v1491_v55 = vpop.eup %1490  ;;  %v588_v7 = vmul.f32 0.6931472, %v1489_v49  ;;  %1514 = vlog2.f32 %v667_v37  ;;  %v1977_v0 = vmul.f32 0.6931472, %v1487_v15  ;;  %v627_v10 = vmul.f32 %v1879_v13, %v626_v35 }
 0x117   : > { %v1961_v54 = vpop.eup %1492  ;;  %vm1980_vm6 = vcmp.lt.f32.partialorder %v628_v17, 0.0004427343  ;;  %v585_v49 = vsel %vm1926_vm1, %v582_v4, %v579_v28  ;;  %vm1986_vm7 = vcmp.lt.f32.partialorder %v637_v41, 0.0004427343  ;;  %vm1990_vm8 = vcmp.lt.f32.partialorder %v646_v11, 0.0004427343 }
 0x118   : > { %v1495_v32 = vpop.eup %1494  ;;  %v703_v47 = vadd.f32 1.0, %v1961_v54  ;;  %v671_v15 = vadd.f32 1.0, %v670_v40  ;;  %v1996_v12 = vmul.f32 %v1891_v27, %v644_v31  ;;  %v1999_v16 = vmul.f32 %v1898_v38, %v653_v45 }
 0x119   : > { %v1497_v19 = vpop.eup %1496  ;;  %v615_v5 = vmul.f32 0.6931472, %v1495_v32  ;;  %vm2001_vm9 = vcmp.lt.f32.partialorder %v655_v46, 0.0004427343  ;;  %v673_v32 = vand.u32 2147483647, %v1924_v42  ;;  %v594_v43 = vsel %vm1941_vm2, %v1939_v1, %v588_v7 }
 0x11a   : > { %v1975_v62 = vpop.eup %1498  ;;  %1516 = vlog2.f32 %v703_v47  ;;  %v2011_v41 = vmul.f32 0.6931472, %v1491_v55  ;;  %v624_v17 = vmul.f32 0.6931472, %v1497_v19  ;;  %v2563_v38 = vmax.f32 %v1819_v33, 0.0 }
 0x11b   : > { %v1501_v58 = vpop.eup %1500  ;;  %v694_v13 = vadd.f32 1.0, %v1975_v62  ;;  %v688_v40 = vmul.f32 -0.5, %v1915_v20  ;;  %v621_v7 = vsel %vm1955_vm4, %v618_v59, %v615_v5  ;;  %v2026_v19 = vmul.f32 %v1924_v42, %v671_v15 }
 0x11c   : > { %v1503_v35 = vpop.eup %1502  ;;  %v2015_v28 = vadd.f32 %v585_v49, %v2563_v38  ;;  %v661_v1 = vmul.f32 -0.5, %v1909_v63  ;;  %v511_v33 = vmax.f32 %v1860_v50, 0.0  ;;  %v2564_v2 = vmax.f32 %v1823_v36, 0.0 }
 0x11d   : > { %v2006_v11 = vpop.eup %1504  ;;  %1518 = vlog2.f32 %v694_v13  ;;  %v2034_v46 = vmul.f32 0.6931472, %v1501_v58  ;;  %v642_v47 = vmul.f32 0.6931472, %v1503_v35  ;;  %v612_v25 = vsel %vm1965_vm5, %v1953_v14, %v2011_v41 }
 0x11e   : > { %v1507_v27 = vpop.eup %1506  ;;  %v712_v45 = vadd.f32 1.0, %v2006_v11  ;;  %v2032_v55 = vadd.f32 %v594_v43, %v2564_v2  ;;  %v630_v42 = vsel %vm1980_vm6, %v627_v10, %v624_v17  ;;  %v706_v5 = vmul.f32 -0.5, %v1961_v54 }
 0x11f   : > { %v1509_v49 = vpop.eup %1508  ;;  %v651_v59 = vmul.f32 0.6931472, %v1507_v27  ;;  %v2565_v36 = vmax.f32 %v1829_v44, 0.0  ;;  %v679_v58 = vmul.f32 -0.5, %v1919_v30  ;;  %v689_v35 = vadd.f32 1.0, %v688_v40 }
 0x120   : > { %1520 = vlog2.f32 %v712_v45  ;;  %v1511_v15 = vpop.eup %1510  ;;  %v510_v43 = vmax.f32 %v1873_v3, 0.0  ;;  %v662_v38 = vadd.f32 1.0, %v661_v1  ;;  %v664_v45 = vand.u32 2147483647, %v1909_v63 }
 0x121   : > { %v2045_v13 = vadd.f32 %v621_v7, %v2565_v36  ;;  %v691_v2 = vand.u32 2147483647, %v1915_v20  ;;  %v697_v10 = vmul.f32 -0.5, %v1975_v62  ;;  %v2566_v44 = vmax.f32 %v1832_v48, 0.0 }
 0x122   : > { %v648_v27 = vsel %vm1990_vm8, %v1996_v12, %v642_v47  ;;  %vm2061_vm10 = vcmp.lt.f32.partialorder %v673_v32, 0.0004427343  ;;  %v687_v40 = vmul.f32 0.6931472, %v1509_v49  ;;  %v1513_v7 = vpop.eup %1512  ;;  %v657_v1 = vsel %vm2001_vm9, %v1999_v16, %v651_v59 }
 0x123   : > { %v726_v17 = vadd.f32 %v630_v42, %v2566_v44  ;;  %v660_v36 = vmul.f32 0.6931472, %v1511_v15  ;;  %v682_v31 = vand.u32 2147483647, %v1919_v30  ;;  %v707_v51 = vadd.f32 1.0, %v706_v5  ;;  %v1515_v48 = vpop.eup %1514 }
 0x124   : > { %v680_v42 = vadd.f32 1.0, %v679_v58  ;;  %v690_v44 = vmul.f32 %v1915_v20, %v689_v35  ;;  %v709_v37 = vand.u32 2147483647, %v1961_v54  ;;  %v715_v12 = vmul.f32 -0.5, %v2006_v11 }
 0x125   : > { %v663_v47 = vmul.f32 %v1909_v63, %v662_v38  ;;  %vm2073_vm11 = vcmp.lt.f32.partialorder %v664_v45, 0.0004427343  ;;  %vm692_vm12 = vcmp.lt.f32.partialorder %v691_v2, 0.0004427343  ;;  %v698_v16 = vadd.f32 1.0, %v697_v10 }
 0x126   : > { %v678_v4 = vmul.f32 0.6931472, %v1513_v7  ;;  %v693_v59 = vsel %vm692_vm12, %v690_v44, %v687_v40  ;;  %v700_v15 = vand.u32 2147483647, %v1975_v62  ;;  %v669_v58 = vmul.f32 0.6931472, %v1515_v48 }
 0x127   : > { %v1517_v32 = vpop.eup %1516  ;;  %v666_v20 = vsel %vm2073_vm11, %v663_v47, %v660_v36  ;;  %vm2080_vm13 = vcmp.lt.f32.partialorder %v682_v31, 0.0004427343  ;;  %v708_v63 = vmul.f32 %v1961_v54, %v707_v51  ;;  %v681_v45 = vmul.f32 %v1919_v30, %v680_v42 }
 0x128   : > { %v705_v5 = vmul.f32 0.6931472, %v1517_v32  ;;  %vm2086_vm14 = vcmp.lt.f32.partialorder %v709_v37, 0.0004427343  ;;  %v716_v10 = vadd.f32 1.0, %v715_v12  ;;  %v2575_v7 = vmax.f32 %v1853_v29, 0.0 }
 0x129   : > { %v718_v40 = vand.u32 2147483647, %v2006_v11  ;;  %v699_v44 = vmul.f32 %v1975_v62, %v698_v16  ;;  %v2576_v54 = vmax.f32 %v1846_v18, 0.0  ;;  %v684_v30 = vsel %vm2080_vm13, %v681_v45, %v678_v4 }
 0x12a   : > { %v1519_v38 = vpop.eup %1518  ;;  %v733_v48 = vadd.f32 %v693_v59, %v2575_v7  ;;  %v711_v31 = vsel %vm2086_vm14, %v708_v63, %v705_v5  ;;  %vm701_vm15 = vcmp.lt.f32.partialorder %v700_v15, 0.0004427343  ;;  %v512_v42 = vmax.f32 %v1885_v21, 0.0 }
 0x12b   : > { %v696_v36 = vmul.f32 0.6931472, %v1519_v38  ;;  %v730_v51 = vadd.f32 %v666_v20, %v2576_v54  ;;  %v2577_v12 = vmax.f32 %v1838_v57, 0.0  ;;  %v2578_v32 = vmax.f32 %v1841_v61, 0.0 }
 0x12c   : > { %v675_v62 = vsel %vm2061_vm10, %v2026_v19, %v669_v58  ;;  %v735_v18 = vadd.f32 %v711_v31, %v511_v33  ;;  %v717_v59 = vmul.f32 %v2006_v11, %v716_v10  ;;  %v742_v21 = vmul.f32 0.2, %v726_v17 }
 0x12d   : > { %v1521_v37 = vpop.eup %1520  ;;  %v728_v29 = vadd.f32 %v648_v27, %v2577_v12  ;;  %v729_v47 = vadd.f32 %v657_v1, %v2578_v32  ;;  %v702_v49 = vsel %vm701_vm15, %v699_v44, %v696_v36  ;;  %v2579_v5 = vmax.f32 %v1848_v24, 0.0 }
 0x12e   : > { %v734_v16 = vadd.f32 %v702_v49, %v510_v43  ;;  %v714_v4 = vmul.f32 0.6931472, %v1521_v37  ;;  %v749_v27 = vmul.f32 0.2, %v733_v48  ;;  %vm719_vm0 = vcmp.lt.f32.partialorder %v718_v40, 0.0004427343  ;;  %v2157_v48 = vpop.permute.xlu1 %786 }
 0x12f   : > { %v732_v57 = vadd.f32 %v684_v30, %v2579_v5  ;;  %v2580_v61 = vmax.f32 %v1850_v26, 0.0  ;;  %v746_v15 = vmul.f32 0.2, %v730_v51  ;;  %v738_v58 = vmul.f32 0.2, %v2032_v55 }
 0x130   : > { %v750_v3 = vmul.f32 0.2, %v734_v16  ;;  %v720_v19 = vsel %vm719_vm0, %v717_v59, %v714_v4  ;;  %v2581_v50 = vmax.f32 %v1825_v39, 0.0  ;;  %v745_v24 = vmul.f32 0.2, %v729_v47 }
 0x131   : > { %v731_v1 = vadd.f32 %v675_v62, %v2580_v61  ;;  %v736_v33 = vadd.f32 %v720_v19, %v512_v42  ;;  %v741_v43 = vmul.f32 0.2, %v2045_v13  ;;  %v2582_v26 = vmax.f32 %v1835_v53, 0.0 }
 0x132   : > { %v724_v11 = vadd.f32 %v612_v25, %v2581_v50  ;;  %v2583_v17 = vsel %vm1986_vm7, %v1973_v23, %v2034_v46  ;;  %v751_v20 = vmul.f32 0.2, %v735_v18  ;;  %v758_v39 = vpack.c.bf16 %v750_v3, %v746_v15  ;;  %v777_v42 = vpop.permute.xlu1 %776 }
 0x133   : > { %v727_v55 = vadd.f32 %v2583_v17, %v2582_v26  ;;  %v744_v35 = vmul.f32 0.2, %v728_v29  ;;  %v748_v60 = vmul.f32 0.2, %v732_v57  ;;  %v752_v63 = vmul.f32 0.2, %v736_v33 }
 0x134   : > { %v757_v38 = vpack.c.bf16 %v749_v27, %v745_v24  ;;  %v2584_v14 = vmax.f32 %v1821_v34, 0.0  ;;  %v2585_v41 = vsel %vm1947_vm3, %v1934_v56, %v1977_v0  ;;  %v747_v25 = vmul.f32 0.2, %v731_v1  ;;  %816 = vmatprep.subr.bf16.mxu0 %v758_v39  ;;  %v2586_v0 = vld [vmem:[#allocation6_spill] sm:$0xff] }
 0x135   : > { %v754_v22 = vpack.c.bf16 %v742_v21, %v738_v58  ;;  %v737_v23 = vmul.f32 0.2, %v2015_v28  ;;  %v740_v46 = vmul.f32 0.2, %v724_v11  ;;  %v760_v13 = vpack.c.bf16 %v752_v63, %v748_v60 }
 0x136   : > { %v723_v53 = vadd.f32 %v2585_v41, %v2584_v14  ;;  %817 = vmatpush1.bf16.msra.mxu0 %v757_v38  ;;  %v743_v45 = vmul.f32 0.2, %v727_v55  ;;  %v759_v2 = vpack.c.bf16 %v751_v20, %v747_v25  ;;  %vm799_vm1 = vcmask 392192  }
 0x137   : > { %818 = vmatprep.subr.bf16.mxu0 %v754_v22  ;;  %869 = vmatprep.subr.bf16.mxu1 %v760_v13  ;;  %v756_v10 = vpack.c.bf16 %v744_v35, %v740_v46  ;;  %v753_v34 = vpack.c.bf16 %v741_v43, %v737_v23  ;;  %v2587_v28 = vmov 0  }
 0x138   : > { %v739_v40 = vmul.f32 0.2, %v723_v53  ;;  %870 = vmatpush1.bf16.msra.mxu1 %v759_v2 }
 0x139   : > { %871 = vmatprep.subr.bf16.mxu1 %v756_v10 }
 0x13a   : > { %819 = vmatpush1.bf16.msra.mxu0 %v753_v34  ;;  %v755_v56 = vpack.c.bf16 %v743_v45, %v739_v40 }
 0x13b   : > { %820 = vmatprep.subr.bf16.mxu0 %v1766_v6  ;;  %v1457_v6 = vld [vmem:[%s2533_s2 + $0x8] sm:$0xff]  }
 0x13c   : > { %872 = vmatpush1.bf16.msra.mxu1 %v755_v56 }
 0x13d   : > { %873 = vmatprep.subr.bf16.mxu1 %v1772_v8 }
 0x13e   : > { %821 = vmatpush1.bf16.msra.mxu0 %v1776_v9  ;;  %v782_v9 = vpop.permute.xlu0 %781 }
 0x140   : > { %874 = vmatpush1.bf16.msra.mxu1 %v2586_v0 }
 0x141   : > { %1393 = vmatmul.mubr.msk.bf16.vlgmr.msra.gmra.mxu0 %vm799_vm1, %v1456_v52 }
 0x142   : > { %848 = vmatprep.mubr.bf16.mxu0 %v2587_v28  ;;  %v772_v36 = vpop.permute.xlu0 %771 }
 0x143   : > { %1395 = vmatmul.mubr.msk.bf16.vlgmr.msra.gmra.mxu1 %vm799_vm1, %v1456_v52 }
 0x144   : > { %901 = vmatprep.mubr.bf16.mxu1 %v2587_v28 }
 0x149   : > { %1394 = vmatmul.mubr.msk.bf16.gmra.mxu0 %vm799_vm1, %v1457_v6 }
 0x14a   : > { %1234 = vmatprep.mubr.bf16.mxu0 %v2587_v28 }
 0x14b   : > { %1396 = vmatmul.mubr.msk.bf16.gmra.mxu1 %vm799_vm1, %v1457_v6 }
 0x14c   : > { %1275 = vmatprep.mubr.bf16.mxu1 %v2587_v28 }
 0x201   : > { %v840_v8 = vpop.f32.mrf.mxu0 }
 0x202   : > { %v841_v30 = vadd.f32 %v840_v8, %v772_v36 }
 0x203   : > { %v842_v7 = vpop.f32.mrf.mxu0  ;;  %v893_v31 = vpop.f32.mrf.mxu1 }
 0x204   : > { %v843_v44 = vadd.f32 %v842_v7, %v772_v36  ;;  %v2161_v47 = vmul.f32 5.0, %v841_v30  ;;  %v894_v62 = vadd.f32 %v893_v31, %v772_v36 }
 0x205   : > { %v844_v54 = vpop.f32.mrf.mxu0  ;;  %v895_v51 = vpop.f32.mrf.mxu1 }
 0x206   : > { %v2159_v37 = vmul.f32 5.0, %v843_v44  ;;  %v845_v29 = vadd.f32 %v844_v54, %v777_v42  ;;  %v896_v16 = vadd.f32 %v895_v51, %v772_v36  ;;  %v944_v5 = vand.u32 2147483647, %v2161_v47 }
 0x207   : > { %v846_v12 = vpop.f32.mrf.mxu0  ;;  %v897_v32 = vpop.f32.mrf.mxu1  ;;  %v2167_v27 = vmul.f32 5.0, %v894_v62 }
 0x208   : > { %v945_v49 = vand.u32 2147483647, %v2159_v37  ;;  %v2164_v4 = vmul.f32 5.0, %v845_v29  ;;  %v898_v59 = vadd.f32 %v897_v32, %v777_v42  ;;  %v847_v57 = vadd.f32 %v846_v12, %v777_v42 }
 0x209   : > { %v850_v18 = vpop.f32.mrf.mxu0  ;;  %v899_v21 = vpop.f32.mrf.mxu1  ;;  %v2169_v3 = vmul.f32 5.0, %v896_v16  ;;  %v960_v11 = vsub.f32 0.0, %v944_v5  ;;  %v946_v43 = vand.u32 2147483647, %v2167_v27 }
 0x20a   : > { %v961_v61 = vsub.f32 0.0, %v945_v49  ;;  %v851_v1 = vadd.f32 %v850_v18, %v782_v9  ;;  %v948_v19 = vand.u32 2147483647, %v2164_v4  ;;  %v2172_v58 = vmul.f32 5.0, %v898_v59 }
 0x20b   : > { %v852_v15 = vpop.f32.mrf.mxu0  ;;  %v903_v50 = vpop.f32.mrf.mxu1  ;;  %v2174_v24 = vmul.f32 5.0, %v847_v57  ;;  %v947_v55 = vand.u32 2147483647, %v2169_v3  ;;  %v900_v60 = vadd.f32 %v899_v21, %v777_v42  ;;  %v976_v38 = vmul.f32 1.442695, %v960_v11 }
 0x20c   : > { %v853_v33 = vadd.f32 %v852_v15, %v782_v9  ;;  %v978_v26 = vmul.f32 1.442695, %v961_v61  ;;  %v2177_v17 = vmul.f32 5.0, %v851_v1  ;;  %v964_v20 = vsub.f32 0.0, %v948_v19 }
 0x20d   : > { %v854_v39 = vpop.f32.mrf.mxu0  ;;  %v950_v35 = vand.u32 2147483647, %v2172_v58  ;;  %v905_v63 = vpop.f32.mrf.mxu1  ;;  %v949_v14 = vand.u32 2147483647, %v2174_v24  ;;  %v904_v41 = vadd.f32 %v903_v50, %v782_v9  ;;  %v962_v25 = vsub.f32 0.0, %v946_v43 }
 0x20e   : > { %v2182_v53 = vmul.f32 5.0, %v853_v33  ;;  %1522 = vpow2.f32 %v978_v26  ;;  %v952_v22 = vand.u32 2147483647, %v2177_v17  ;;  %v855_v23 = vadd.f32 %v854_v39, %v2157_v48 }
 0x20f   : > { %v963_v46 = vsub.f32 0.0, %v947_v55  ;;  %v984_v13 = vmul.f32 1.442695, %v964_v20  ;;  %v906_v45 = vadd.f32 %v905_v63, %v782_v9  ;;  %v966_v2 = vsub.f32 0.0, %v950_v35  ;;  %v907_v7 = vpop.f32.mrf.mxu1  ;;  %v856_v32 = vpop.f32.mrf.mxu0 }
 0x210   : > { %v2186_v10 = vmul.f32 5.0, %v900_v60  ;;  %1524 = vpow2.f32 %v976_v38  ;;  %v965_v34 = vsub.f32 0.0, %v949_v14  ;;  %v2188_v40 = vmul.f32 5.0, %v904_v41 }
 0x211   : > { %v953_v56 = vand.u32 2147483647, %v2182_v53  ;;  %v980_v52 = vmul.f32 1.442695, %v962_v25  ;;  %v968_v0 = vsub.f32 0.0, %v952_v22  ;;  %v2191_v28 = vmul.f32 5.0, %v855_v23  ;;  %v909_v11 = vpop.f32.mrf.mxu1 }
 0x212   : > { %v982_v6 = vmul.f32 1.442695, %v963_v46  ;;  %1526 = vpow2.f32 %v984_v13  ;;  %v2193_v8 = vmul.f32 5.0, %v906_v45  ;;  %v988_v31 = vmul.f32 1.442695, %v966_v2 }
 0x213   : > { %v951_v9 = vand.u32 2147483647, %v2186_v10  ;;  %v986_v36 = vmul.f32 1.442695, %v965_v34  ;;  %v954_v44 = vand.u32 2147483647, %v2188_v40  ;;  %1528 = vpow2.f32 %v980_v52 }
 0x214   : > { %v969_v54 = vsub.f32 0.0, %v953_v56  ;;  %v992_v51 = vmul.f32 1.442695, %v968_v0  ;;  %v956_v30 = vand.u32 2147483647, %v2191_v28  ;;  %v908_v42 = vadd.f32 %v907_v7, %v2157_v48 }
 0x215   : > { %1530 = vpow2.f32 %v982_v6  ;;  %v955_v12 = vand.u32 2147483647, %v2193_v8  ;;  %v967_v29 = vsub.f32 0.0, %v951_v9  ;;  %v970_v62 = vsub.f32 0.0, %v954_v44 }
 0x216   : > { %1532 = vpow2.f32 %v988_v31  ;;  %v994_v49 = vmul.f32 1.442695, %v969_v54  ;;  %v972_v18 = vsub.f32 0.0, %v956_v30  ;;  %v2200_v16 = vmul.f32 5.0, %v908_v42 }
 0x217   : > { %1534 = vpow2.f32 %v986_v36  ;;  %v971_v21 = vsub.f32 0.0, %v955_v12  ;;  %v857_v5 = vadd.f32 %v856_v32, %v2157_v48  ;;  %v990_v57 = vmul.f32 1.442695, %v967_v29 }
 0x218   : > { %1536 = vpow2.f32 %v992_v51  ;;  %v996_v61 = vmul.f32 1.442695, %v970_v62  ;;  %v1000_v1 = vmul.f32 1.442695, %v972_v18  ;;  %v958_v50 = vand.u32 2147483647, %v2200_v16 }
 0x219   : > { %1538 = vpow2.f32 %v994_v49  ;;  %v998_v33 = vmul.f32 1.442695, %v971_v21  ;;  %v2209_v43 = vmul.f32 5.0, %v857_v5  ;;  %v910_v35 = vadd.f32 %v909_v11, %v2157_v48 }
 0x21a   : > { %1540 = vpow2.f32 %v1000_v1  ;;  %v974_v55 = vsub.f32 0.0, %v958_v50  ;;  %v928_v25 = vmax.f32 %v2161_v47, 0.0  ;;  %v929_v22 = vmax.f32 %v2159_v37, 0.0 }
 0x21b   : > { %v2202_v59 = vpop.eup %1522  ;;  %1542 = vpow2.f32 %v990_v57  ;;  %v957_v39 = vand.u32 2147483647, %v2209_v43  ;;  %v932_v46 = vmax.f32 %v2164_v4, 0.0  ;;  %v2227_v13 = vmul.f32 5.0, %v910_v35 }
 0x21c   : > { %v1017_v19 = vadd.f32 1.0, %v2202_v59  ;;  %1544 = vpow2.f32 %v996_v61  ;;  %v1004_v60 = vmul.f32 1.442695, %v974_v55  ;;  %v933_v56 = vmax.f32 %v2174_v24, 0.0 }
 0x21d   : > { %v2205_v15 = vpop.eup %1524  ;;  %v973_v14 = vsub.f32 0.0, %v957_v39  ;;  %v959_v42 = vand.u32 2147483647, %v2227_v13  ;;  %v1020_v29 = vmul.f32 -0.5, %v2202_v59  ;;  %v1023_v18 = vand.u32 2147483647, %v2202_v59 }
 0x21e   : > { %v1008_v20 = vadd.f32 1.0, %v2205_v15  ;;  %1546 = vlog2.f32 %v1017_v19  ;;  %v1011_v6 = vmul.f32 -0.5, %v2205_v15  ;;  %v1014_v57 = vand.u32 2147483647, %v2205_v15 }
 0x21f   : > { %v2211_v26 = vpop.eup %1526  ;;  %1548 = vpow2.f32 %v998_v33  ;;  %v1002_v31 = vmul.f32 1.442695, %v973_v14  ;;  %v975_v21 = vsub.f32 0.0, %v959_v42  ;;  %v1021_v39 = vadd.f32 1.0, %v1020_v29 }
 0x220   : > { %v2216_v63 = vpop.eup %1528  ;;  %v1044_v38 = vadd.f32 1.0, %v2211_v26  ;;  %1550 = vpow2.f32 %v1004_v60  ;;  %v1012_v49 = vadd.f32 1.0, %v1011_v6  ;;  %vm2267_vm2 = vcmp.lt.f32.partialorder %v1023_v18, 0.0004427343 }
 0x221   : > { %1552 = vlog2.f32 %v1008_v20  ;;  %v1026_v2 = vadd.f32 1.0, %v2216_v63  ;;  %v1029_v9 = vmul.f32 -0.5, %v2216_v63  ;;  %v1006_v33 = vmul.f32 1.442695, %v975_v21 }
 0x222   : > { %v2219_v41 = vpop.eup %1530  ;;  %1554 = vlog2.f32 %v1044_v38  ;;  %v2265_v38 = vmul.f32 %v2205_v15, %v1012_v49  ;;  %vm2274_vm3 = vcmp.lt.f32.partialorder %v1014_v57, 0.0004427343  ;;  %v1050_v42 = vand.u32 2147483647, %v2211_v26 }
 0x223   : > { %v2223_v23 = vpop.eup %1532  ;;  %v1035_v7 = vadd.f32 1.0, %v2219_v41  ;;  %1556 = vpow2.f32 %v1002_v31  ;;  %v1030_v61 = vadd.f32 1.0, %v1029_v9  ;;  %v1038_v1 = vmul.f32 -0.5, %v2219_v41 }
 0x224   : > { %v2229_v45 = vpop.eup %1534  ;;  %v1062_v36 = vadd.f32 1.0, %v2223_v23  ;;  %1558 = vlog2.f32 %v1026_v2  ;;  %v1047_v2 = vmul.f32 -0.5, %v2211_v26  ;;  %v1041_v9 = vand.u32 2147483647, %v2219_v41 }
 0x225   : > { %v2235_v0 = vpop.eup %1536  ;;  %v1053_v51 = vadd.f32 1.0, %v2229_v45  ;;  %1560 = vlog2.f32 %v1035_v7  ;;  %v1039_v31 = vadd.f32 1.0, %v1038_v1  ;;  %v1065_v29 = vmul.f32 -0.5, %v2223_v23 }
 0x226   : > { %v2246_v12 = vpop.eup %1538  ;;  %v1080_v32 = vadd.f32 1.0, %v2235_v0  ;;  %1562 = vlog2.f32 %v1062_v36  ;;  %v1022_v18 = vmul.f32 %v2202_v59, %v1021_v39  ;;  %v1056_v21 = vmul.f32 -0.5, %v2229_v45 }
 0x227   : > { %v2252_v5 = vpop.eup %1540  ;;  %1564 = vlog2.f32 %v1053_v51  ;;  %v1089_v50 = vadd.f32 1.0, %v2246_v12  ;;  %v2283_v51 = vmul.f32 %v2216_v63, %v1030_v61  ;;  %v1048_v1 = vadd.f32 1.0, %v1047_v2 }
 0x228   : > { %v2256_v19 = vpop.eup %1542  ;;  %v1116_v11 = vadd.f32 1.0, %v2252_v5  ;;  %1566 = vlog2.f32 %v1080_v32  ;;  %v2294_v48 = vmul.f32 %v2219_v41, %v1039_v31  ;;  %vm2298_vm4 = vcmp.lt.f32.partialorder %v1050_v42, 0.0004427343 }
 0x229   : > { %v2260_v55 = vpop.eup %1544  ;;  %v1071_v36 = vadd.f32 1.0, %v2256_v19  ;;  %v1066_v2 = vadd.f32 1.0, %v1065_v29  ;;  %v1057_v41 = vadd.f32 1.0, %v1056_v21  ;;  %v1059_v31 = vand.u32 2147483647, %v2229_v45 }
 0x22a   : > { %1568 = vlog2.f32 %v1116_v11  ;;  %v1098_v57 = vadd.f32 1.0, %v2260_v55  ;;  %v1068_v11 = vand.u32 2147483647, %v2223_v23  ;;  %v1101_v54 = vmul.f32 -0.5, %v2260_v55 }
 0x22b   : > { %v1547_v60 = vpop.eup %1546  ;;  %1570 = vpow2.f32 %v1006_v33  ;;  %v1074_v33 = vmul.f32 -0.5, %v2256_v19  ;;  %vm2309_vm5 = vcmp.lt.f32.partialorder %v1041_v9, 0.0004427343  ;;  %v1049_v30 = vmul.f32 %v2211_v26, %v1048_v1 }
 0x22c   : > { %v2272_v6 = vpop.eup %1548  ;;  %1572 = vlog2.f32 %v1089_v50  ;;  %v1019_v49 = vmul.f32 0.6931472, %v1547_v60  ;;  %v1083_v50 = vmul.f32 -0.5, %v2235_v0  ;;  %v1086_v14 = vand.u32 2147483647, %v2235_v0 }
 0x22d   : > { %v2280_v15 = vpop.eup %1550  ;;  %1574 = vlog2.f32 %v1071_v36  ;;  %v1107_v59 = vadd.f32 1.0, %v2272_v6  ;;  %v1075_v44 = vadd.f32 1.0, %v1074_v33  ;;  %v1102_v21 = vadd.f32 1.0, %v1101_v54 }
 0x22e   : > { %v1553_v32 = vpop.eup %1552  ;;  %v1134_v61 = vadd.f32 1.0, %v2280_v15  ;;  %v1025_v62 = vsel %vm2267_vm2, %v1022_v18, %v1019_v49  ;;  %1576 = vlog2.f32 %v1098_v57  ;;  %v1084_v35 = vadd.f32 1.0, %v1083_v50 }
 0x22f   : > { %v1555_v34 = vpop.eup %1554  ;;  %v1010_v39 = vmul.f32 0.6931472, %v1553_v32  ;;  %v1153_v18 = vadd.f32 %v1025_v62, %v929_v22  ;;  %v2321_v57 = vmul.f32 %v2223_v23, %v1066_v2  ;;  %v1058_v26 = vmul.f32 %v2229_v45, %v1057_v41 }
 0x230   : > { %v2303_v20 = vpop.eup %1556  ;;  %v1046_v52 = vmul.f32 0.6931472, %v1555_v34  ;;  %1578 = vlog2.f32 %v1134_v61  ;;  %v1077_v1 = vand.u32 2147483647, %v2256_v19  ;;  %v1119_v33 = vmul.f32 -0.5, %v2252_v5 }
 0x231   : > { %v1559_v36 = vpop.eup %1558  ;;  %v1125_v42 = vadd.f32 1.0, %v2303_v20  ;;  %1580 = vlog2.f32 %v1107_v59  ;;  %v1016_v34 = vsel %vm2274_vm3, %v2265_v38, %v1010_v39  ;;  %vm2328_vm6 = vcmp.lt.f32.partialorder %v1059_v31, 0.0004427343 }
 0x232   : > { %v1561_v32 = vpop.eup %1560  ;;  %v1052_v7 = vsel %vm2298_vm4, %v1049_v30, %v1046_v52  ;;  %v2333_v37 = vmul.f32 %v2256_v19, %v1075_v44  ;;  %v1092_v22 = vmul.f32 -0.5, %v2246_v12  ;;  %v2338_v45 = vadd.f32 %v1016_v34, %v928_v25 }
 0x233   : > { %v1563_v49 = vpop.eup %1562  ;;  %1582 = vlog2.f32 %v1125_v42  ;;  %v1085_v62 = vmul.f32 %v2235_v0, %v1084_v35  ;;  %vm2341_vm7 = vcmp.lt.f32.partialorder %v1086_v14, 0.0004427343  ;;  %v1104_v52 = vand.u32 2147483647, %v2260_v55 }
 0x234   : > { %v1565_v9 = vpop.eup %1564  ;;  %v2348_v59 = vmul.f32 0.6931472, %v1559_v36  ;;  %v2350_v44 = vmul.f32 0.2, %v1153_v18  ;;  %v2352_v19 = vmul.f32 0.6931472, %v1561_v32  ;;  %v2355_v47 = vmul.f32 %v2260_v55, %v1102_v21 }
 0x235   : > { %v1567_v61 = vpop.eup %1566  ;;  %v1156_v0 = vadd.f32 %v1052_v7, %v932_v46  ;;  %v1055_v35 = vmul.f32 0.6931472, %v1565_v9  ;;  %v1120_v39 = vadd.f32 1.0, %v1119_v33  ;;  %vm2360_vm8 = vcmp.lt.f32.partialorder %v1077_v1, 0.0004427343 }
 0x236   : > { %v1093_v41 = vadd.f32 1.0, %v1092_v22  ;;  %v1122_v31 = vand.u32 2147483647, %v2252_v5  ;;  %v942_v36 = vmax.f32 %v2200_v16, 0.0  ;;  %v1128_v55 = vmul.f32 -0.5, %v2303_v20 }
 0x237   : > { %v1569_v54 = vpop.eup %1568  ;;  %v2367_v42 = vmul.f32 0.6931472, %v1563_v49  ;;  %v1095_v4 = vand.u32 2147483647, %v2246_v12  ;;  %v1043_v14 = vsel %vm2309_vm5, %v2294_v48, %v2352_v19  ;;  %v1082_v34 = vmul.f32 0.6931472, %v1567_v61 }
 0x238   : > { %v2346_v30 = vpop.eup %1570  ;;  %v1118_v46 = vmul.f32 0.6931472, %v1569_v54  ;;  %v1137_v21 = vmul.f32 -0.5, %v2280_v15  ;;  %v2375_v9 = vmul.f32 0.2, %v1156_v0  ;;  %v1061_v49 = vsel %vm2328_vm6, %v1058_v26, %v1055_v35 }
 0x239   : > { %v1573_v25 = vpop.eup %1572  ;;  %v1143_v60 = vadd.f32 1.0, %v2346_v30  ;;  %v1110_v1 = vmul.f32 -0.5, %v2272_v6  ;;  %v1121_v33 = vmul.f32 %v2252_v5, %v1120_v39  ;;  %v1094_v22 = vmul.f32 %v2246_v12, %v1093_v41 }
 0x23a   : > { %v1575_v32 = vpop.eup %1574  ;;  %v1091_v18 = vmul.f32 0.6931472, %v1573_v25  ;;  %vm2382_vm9 = vcmp.lt.f32.partialorder %v1122_v31, 0.0004427343  ;;  %v941_v61 = vmax.f32 %v2209_v43, 0.0  ;;  %v1129_v25 = vadd.f32 1.0, %v1128_v55 }
 0x23b   : > { %1584 = vlog2.f32 %v1143_v60  ;;  %v1577_v7 = vpop.eup %1576  ;;  %vm2389_vm10 = vcmp.lt.f32.partialorder %v1068_v11, 0.0004427343  ;;  %v1073_v26 = vmul.f32 0.6931472, %v1575_v32  ;;  %vm2393_vm11 = vcmp.lt.f32.partialorder %v1104_v52, 0.0004427343 }
 0x23c   : > { %vm2397_vm12 = vcmp.lt.f32.partialorder %v1095_v4, 0.0004427343  ;;  %v1124_v43 = vsel %vm2382_vm9, %v1121_v33, %v1118_v46  ;;  %v1131_v0 = vand.u32 2147483647, %v2303_v20  ;;  %v1157_v23 = vadd.f32 %v1061_v49, %v933_v56 }
 0x23d   : > { %v1579_v60 = vpop.eup %1578  ;;  %v1088_v11 = vsel %vm2341_vm7, %v1085_v62, %v1082_v34  ;;  %v1097_v52 = vsel %vm2397_vm12, %v1094_v22, %v1091_v18  ;;  %v1138_v39 = vadd.f32 1.0, %v1137_v21  ;;  %v1111_v31 = vadd.f32 1.0, %v1110_v1 }
 0x23e   : > { %v1581_v35 = vpop.eup %1580  ;;  %v1113_v55 = vand.u32 2147483647, %v2272_v6  ;;  %v1140_v4 = vand.u32 2147483647, %v2280_v15  ;;  %v1146_v46 = vmul.f32 -0.5, %v2346_v30  ;;  %v2610_v32 = vmax.f32 %v2191_v28, 0.0 }
 0x23f   : > { %v1136_v24 = vmul.f32 0.6931472, %v1579_v60  ;;  %v1130_v50 = vmul.f32 %v2303_v20, %v1129_v25  ;;  %v1079_v62 = vsel %vm2360_vm8, %v2333_v37, %v1073_v26  ;;  %v2611_v34 = vmax.f32 %v2182_v53, 0.0 }
 0x240   : > { %v1583_v41 = vpop.eup %1582  ;;  %v1164_v33 = vadd.f32 %v1124_v43, %v2610_v32  ;;  %v1109_v21 = vmul.f32 0.6931472, %v1581_v35  ;;  %vm1132_vm13 = vcmp.lt.f32.partialorder %v1131_v0, 0.0004427343  ;;  %v2612_v49 = vmax.f32 %v2177_v17, 0.0 }
 0x241   : > { %v1127_v56 = vmul.f32 0.6931472, %v1583_v41  ;;  %v1161_v18 = vadd.f32 %v1097_v52, %v2611_v34  ;;  %v1100_v22 = vmul.f32 0.6931472, %v1577_v7  ;;  %v1139_v28 = vmul.f32 %v2280_v15, %v1138_v39 }
 0x242   : > { %v1160_v1 = vadd.f32 %v1088_v11, %v2612_v49  ;;  %v1112_v60 = vmul.f32 %v2272_v6, %v1111_v31  ;;  %vm2425_vm14 = vcmp.lt.f32.partialorder %v1140_v4, 0.0004427343  ;;  %v1147_v37 = vadd.f32 1.0, %v1146_v46  ;;  %v1197_v49 = vpop.permute.xlu0 %1196 }
 0x243   : > { %v1133_v54 = vsel %vm1132_vm13, %v1130_v50, %v1127_v56  ;;  %vm2429_vm15 = vcmp.lt.f32.partialorder %v1113_v55, 0.0004427343  ;;  %v1180_v25 = vmul.f32 0.2, %v1164_v33  ;;  %v1142_v17 = vsel %vm2425_vm14, %v1139_v28, %v1136_v24 }
 0x244   : > { %v1165_v2 = vadd.f32 %v1133_v54, %v941_v61  ;;  %v1149_v7 = vand.u32 2147483647, %v2346_v30  ;;  %v1173_v15 = vmul.f32 0.2, %v1157_v23  ;;  %v1177_v26 = vmul.f32 0.2, %v1161_v18 }
 0x245   : > { %v1115_v6 = vsel %vm2429_vm15, %v1112_v60, %v1109_v21  ;;  %v1070_v61 = vsel %vm2389_vm10, %v2321_v57, %v2367_v42  ;;  %v2617_v0 = vmax.f32 %v2186_v10, 0.0  ;;  %v1176_v11 = vmul.f32 0.2, %v1160_v1  ;;  %v1588_v18 = vld [vmem:[%s1763_s29 + $0xc] ss:$16 sps:$4 sm:$0xff]  }
 0x246   : > { %v1181_v12 = vmul.f32 0.2, %v1165_v2  ;;  %v1106_v52 = vsel %vm2393_vm11, %v2355_v47, %v1100_v22  ;;  %v1166_v23 = vadd.f32 %v1142_v17, %v942_v36  ;;  %v1148_v41 = vmul.f32 %v2346_v30, %v1147_v37  ;;  %v1589_v21 = vld [vmem:[%s1763_s29 + $0x8] ss:$16 sps:$4 sm:$0xff]  }
 0x247   : > { %v1159_v35 = vadd.f32 %v1079_v62, %v2617_v0  ;;  %v2618_v55 = vmax.f32 %v2193_v8, 0.0  ;;  %v943_v57 = vmax.f32 %v2227_v13, 0.0  ;;  %vm1150_vm0 = vcmp.lt.f32.partialorder %v1149_v7, 0.0004427343  ;;  %v1587_v62 = vld [vmem:[%s1763_s29] ss:$16 sps:$4 sm:$0xff]  }
 0x248   : > { %v1585_v43 = vpop.eup %1584  ;;  %v1189_v31 = vpack.c.bf16 %v1181_v12, %v1177_v26  ;;  %v1188_v10 = vpack.c.bf16 %v1180_v25, %v1176_v11  ;;  %v2619_v42 = vand.u32 2147483647, %v2216_v63  ;;  %v2622_v16 = vmax.f32 %v2188_v40, 0.0 }
 0x249   : > { %v1145_v39 = vmul.f32 0.6931472, %v1585_v43  ;;  %v1163_v4 = vadd.f32 %v1115_v6, %v2618_v55  ;;  %v1185_v30 = vpack.c.bf16 %v1173_v15, %v2350_v44  ;;  %v1168_v8 = vmul.f32 0.2, %v2338_v45 }
 0x24a   : > { %vm2455_vm2 = vcmp.lt.f32.partialorder %v2619_v42, 0.0004427343  ;;  %v1162_v47 = vadd.f32 %v1106_v52, %v2622_v16  ;;  %1212 = vmatprep.subr.bf16.mxu0 %v1189_v31  ;;  %v2623_v63 = vmax.f32 %v2169_v3, 0.0  ;;  %v930_v44 = vmax.f32 %v2167_v27, 0.0  ;;  %v1586_v27 = vld [vmem:[%s1763_s29 + $0x4] ss:$16 sps:$4 sm:$0xff]  }
 0x24b   : > { %v1151_v36 = vsel %vm1150_vm0, %v1148_v41, %v1145_v39  ;;  %v1034_v13 = vsel %vm2455_vm2, %v2283_v51, %v2348_v59  ;;  %1213 = vmatpush1.bf16.msra.mxu0 %v1188_v10  ;;  %v2624_v45 = vmax.f32 %v2172_v58, 0.0  ;;  %v1182_v32 = vmul.f32 0.2, %v1166_v23  ;;  %s1405_s29 = sshll.u32 %s1371_s28, 9  ;;  %s1653_s28 = smov [#allocation3]  }
 0x24c   : > { %v1155_v40 = vadd.f32 %v1043_v14, %v2623_v63  ;;  %v1167_v5 = vadd.f32 %v1151_v36, %v943_v57  ;;  %1214 = vmatprep.subr.bf16.mxu0 %v1185_v30  ;;  %v1175_v33 = vmul.f32 0.2, %v1159_v35  ;;  %v1179_v51 = vmul.f32 0.2, %v1163_v4  ;;  %s2493_s21 = scalar_lea.hbm %s2538_s7, %s1405_s29  ;;  %s1594_s23 = sshll.u32 %s1653_s28, 4  ;;  %s1595_s23 = int_to_ptr.vmem [resolvable:$false] %s1594_s23 }
 0x24d   : > { %v1158_v46 = vadd.f32 %v1070_v61, %v2624_v45  ;;  %v1184_v3 = vpack.c.bf16 %v2375_v9, %v1168_v8  ;;  %v1154_v29 = vadd.f32 %v1034_v13, %v930_v44  ;;  %v1178_v24 = vmul.f32 0.2, %v1162_v47  ;;  %v1192_v9 = vld [vmem:[%s2534_s3] sm:$0xf]  ;;  %s1596_s8 = scalar_lea.vmem %s1595_s23, 1024  ;;  %p1597_p2 = scmp.lt.s32.totalorder %s1308_s16, %s1595_s23 }
 0x24e   : > { %v1183_v59 = vmul.f32 0.2, %v1167_v5  ;;  %v1171_v48 = vmul.f32 0.2, %v1155_v40  ;;  %p1598_p3 = scmp.lt.s32.totalorder %s1596_s8, %s1590_s22 }
 0x24f   : > { %1215 = vmatpush1.bf16.msra.mxu0 %v1184_v3  ;;  %v1174_v14 = vmul.f32 0.2, %v1158_v46  ;;  %v1190_v56 = vpack.c.bf16 %v1182_v32, %v1178_v24  ;;  %v1170_v50 = vmul.f32 0.2, %v1154_v29 }
 0x250   : > { %v1191_v19 = vpack.c.bf16 %v1183_v59, %v1179_v51  ;;  %1216 = vmatprep.subr.bf16.mxu0 %v1586_v27  ;;  %v1187_v58 = vpack.c.bf16 %v1175_v33, %v1171_v48  ;;  %p1599_p4 = por %p1598_p3, %p1597_p2 }
 0x251   : > { %v1186_v34 = vpack.c.bf16 %v1174_v14, %v1170_v50 }
 0x252   : > { %1253 = vmatprep.subr.bf16.mxu1 %v1191_v19  ;;  %p1600_p5 = pnand %p1599_p4, %p1593_p1 }
 0x253   : > { %1254 = vmatpush1.bf16.msra.mxu1 %v1190_v56  ;;  %1217 = vmatpush1.bf16.msra.mxu0 %v1587_v62 }
 0x254   : > { %1255 = vmatprep.subr.bf16.mxu1 %v1187_v58 }
 0x256   : > { %1397 = vmatmul.mubr.msk.bf16.vlgmr.msra.gmra.mxu0 %vm799_vm1, %v1192_v9 }
 0x257   : > { %1256 = vmatpush1.bf16.msra.mxu1 %v1186_v34 }
 0x258   : > { %1257 = vmatprep.subr.bf16.mxu1 %v1588_v18 }
 0x25b   : > { %1258 = vmatpush1.bf16.msra.mxu1 %v1589_v21 }
 0x25e   : > { %1398 = vmatmul.mubr.msk.bf16.vlgmr.msra.gmra.mxu1 %vm799_vm1, %v1192_v9 }
 0x316   : > { %v1236_v1 = vpop.f32.mrf.mxu0 }
 0x317   : > { %v1237_v22 = vadd.f32 %v1236_v1, %v1197_v49 }
 0x318   : > { %v1238_v28 = vpop.f32.mrf.mxu0 }
 0x319   : > { %v1284_v54 = vmul.f32 0.1, %v1237_v22  ;;  %v1239_v60 = vadd.f32 %v1238_v28, %v1197_v49 }
 0x31a   : > { %v1240_v20 = vpop.f32.mrf.mxu0 }
 0x31b   : > { %1288 = vst [vmem:[%s302_s15] sm:$0xff] %v1284_v54  ;;  %v1285_v2 = vmul.f32 0.1, %v1239_v60 }
 0x31c   : > { %v1241_v37 = vpop.f32.mrf.mxu0 }
 0x31d   : > { %1289 = vst [vmem:[%s302_s15 + $0x8] sm:$0xff] %v1285_v2 }
 0x31e   : > { %v1277_v53 = vpop.f32.mrf.mxu1 }
 0x31f   : > { %v1278_v25 = vadd.f32 %v1277_v53, %v1197_v49 }
 0x320   : > { %v1279_v17 = vpop.f32.mrf.mxu1 }
 0x321   : > { %v1286_v7 = vmul.f32 0.1, %v1278_v25  ;;  %v1280_v15 = vadd.f32 %v1279_v17, %v1197_v49 }
 0x322   : > { %v1281_v26 = vpop.f32.mrf.mxu1 }
 0x323   : > { %1290 = vst [vmem:[%s302_s15 + $0x10] sm:$0xff] %v1286_v7  ;;  %v1287_v6 = vmul.f32 0.1, %v1280_v15 }
 0x324   : > { %v1282_v12 = vpop.f32.mrf.mxu1 }
 0x325   : > { %1291 = vst [vmem:[%s302_s15 + $0x18] sm:$0xff] %v1287_v6 }
 0x326   : > { %1603 = shalt.err (!%p1600_p5)
}
 0x327   : > { %s1604_s9 = scalar_lea.hbm %s2493_s21, 512  ;;  %s1608_s14 = scalar_lea.hbm %s2538_s7, 1024 }
 0x328   : > { %p1605_p7 = scmp.ne.s32.totalorder %s2493_s21, %s1604_s9  ;;  %p1609_p12 = scmp.lt.s32.totalorder %s2493_s21, %s2538_s7 }
 0x329   : > { %p1610_p13 = scmp.lt.s32.totalorder %s1608_s14, %s1604_s9 }
 0x32a   : > { %p1606_p10 = pnand %p1605_p7, %p1732_p6 }
 0x32b   : > { %p1611_p0 = por %p1610_p13, %p1609_p12 }
 0x32c   : > { %p1607_p11 = pneg %p1606_p10 }
 0x32e   : > { %p1612_p1 = pnand %p1611_p0, %p1607_p11 }
 0x330   : > { %1615 = shalt.err (!%p1612_p1)
}
 0x331   : > { %1406 = dma.vmem_to_hbm [thread:$0]  (%p1732_p6), %s1308_s16, 512, %s2493_s21, %s1293_s19  }
 0x332 PF: > { %s1319_s17 = sand.u32 1, %s1638_s24   ;;  %p1409_p2 = pnand %p1374_p9, %p1736_p8 }
 0x333   : > { %s1320_s18 = scalar_lea.sflag [#allocation4], %s1319_s17 }
 0x334   : > { %p1410_p3 = pneg %p1409_p2 }
 0x336   : > { %1633 = dma.done.wait (%p1410_p3), %s1320_s18, 512  }
 0x337   : > { %1635 = vsyncadd (%p1410_p3), %s1320_s18, 4294966784  ;;  %p17_p4 = scmp.ge.s32.totalorder %s1717_s30, 4   ;;  %s2625_s24 = smov %s1642_s25 }
 0x338   : > { %s2626_s25 = smov %s1646_s26  ;;  %s2627_s26 = smov %s1730_s10 }
 0x339   : > { %s2628_s27 = smov %s1717_s30  ;;  %19 = sbr.rel (!%p17_p4) target bundleno = 3 (0x3), region = 111 }
 0x33e   :  { %1325 = vsyncpa [#allocation4], 1 }
 0x33f   :  { %1327 = vsyncpa [#allocation4 + $0x1], 1 }

</bundles_post_ra>
